<compile_context>
chip_gen: v5e
topology: v5e:2x2
jax: 0.10.0
libtpu: 0.0.40
codegen_flags: <defaults>
</compile_context>

<pallas_src>
import functools

import jax
import jax.numpy as jnp
from jax.experimental import pallas as pl
from jax.experimental.pallas import tpu as pltpu


def _round_up(v, k):
    return ((v + k - 1) // k) * k


def _lora_kernel(x_ref, at_ref, bt_ref, o_ref, down_ref):
    # x_ref:    (TM, IN)   row tile of the input (partial last tile is masked)
    # at_ref:   (IN, R)    low_rank_down.weight^T   (grid-invariant)
    # bt_ref:   (R, TN)    low_rank_up.weight^T     (tiled along OUT)
    # o_ref:    (TM, TN)   output tile
    # down_ref: (TM, R)    VMEM scratch holding the rank intermediate; it is
    #                      computed once per row tile (inner OUT axis j == 0)
    #                      and reused for every OUT tile of that row tile.
    @pl.when(pl.program_id(1) == 0)
    def _():
        down = jnp.dot(x_ref[...], at_ref[...],
                       preferred_element_type=jnp.float32)
        down_ref[...] = down.astype(down_ref.dtype)

    up = jnp.dot(down_ref[...], bt_ref[...],
                 preferred_element_type=jnp.float32)
    o_ref[...] = up.astype(o_ref.dtype)


@functools.partial(jax.jit,
                   static_argnames=("block_m", "block_n", "step_bytes"))
def lora_forward(x, a_down, b_up, *, block_m=1024, block_n=2048,
                 step_bytes=8 * 1024 * 1024):
    """Pallas-backed forward of LoRALayer.

    x:      (..., in_features)
    a_down: (rank, in_features)   -- low_rank_down.weight
    b_up:   (out_features, rank)  -- low_rank_up.weight
    returns (..., out_features)
    """
    orig_shape = x.shape
    in_features = orig_shape[-1]
    rank = a_down.shape[0]
    out_features = b_up.shape[0]

    x2d = x.reshape(-1, in_features)
    m = x2d.shape[0]

    out_dtype = x.dtype
    x_item = jnp.dtype(x.dtype).itemsize
    w_item = jnp.dtype(a_down.dtype).itemsize
    out_item = jnp.dtype(out_dtype).itemsize

    # Packed sublane multiple for the row tile: 8 (f32), 16 (bf16), 32 (int8/fp8).
    sub = max(8, 32 // x_item)

    # OUT tiling only when OUT is wide and lane-aligned; otherwise keep it whole
    # (block dim equal to the full array dim is always legal).
    if out_features > block_n and out_features % 128 == 0:
        tn = block_n
    else:
        tn = out_features

    # Row tile from a per-step streamed-byte budget (x tile + out tile per step),
    # rounded to the sublane multiple and clamped to the problem / cap.
    bytes_per_row = in_features * x_item + tn * out_item
    tm = step_bytes // max(bytes_per_row, 1)
    tm = max(sub, (tm // sub) * sub)
    tm = min(tm, block_m, _round_up(m, sub))

    grid = (pl.cdiv(m, tm), pl.cdiv(out_features, tn))

    # Mixed precision: bf16 inputs keep the rank intermediate in bf16 so the
    # up-projection stays on the fast bf16 MXU path; f32 stays exact in f32.
    inter_dtype = jnp.bfloat16 if x.dtype == jnp.bfloat16 else jnp.float32
    inter_item = jnp.dtype(inter_dtype).itemsize

    at = a_down.T  # (IN, R)  -- tiny
    bt = b_up.T    # (R, OUT) -- tiny

    # VMEM working set (double-buffered streamed blocks + weights + temps).
    working_set = (
        2 * tm * in_features * x_item        # x tiles
        + 2 * tm * tn * out_item             # out tiles
        + 2 * in_features * rank * w_item    # A^T (grid-invariant, tiny)
        + 2 * rank * tn * w_item             # B^T
        + tm * rank * inter_item             # down scratch
        + tm * tn * 4 + tm * rank * 4        # f32 MXU result temps
    )
    vmem_limit = int(min(64 * 1024 * 1024,
                         max(working_set * 5 // 4 + (2 << 20), 16 << 20)))

    flops = 2 * m * in_features * rank + 2 * m * rank * out_features
    bytes_accessed = (m * in_features * x_item
                      + in_features * rank * w_item
                      + rank * out_features * w_item
                      + m * out_features * out_item)

    out2d = pl.pallas_call(
        _lora_kernel,
        out_shape=jax.ShapeDtypeStruct((m, out_features), out_dtype),
        grid_spec=pltpu.PrefetchScalarGridSpec(
            num_scalar_prefetch=0,
            grid=grid,
            in_specs=[
                # x: invariant in the inner OUT axis -> fetched once per row tile.
                pl.BlockSpec((tm, in_features), lambda i, j: (i, 0)),
                # Tiny, grid-invariant weight blocks.
                pl.BlockSpec((in_features, rank), lambda i, j: (0, 0)),
                pl.BlockSpec((rank, tn), lambda i, j: (0, j)),
            ],
            out_specs=pl.BlockSpec((tm, tn), lambda i, j: (i, j)),
            scratch_shapes=[pltpu.VMEM((tm, rank), inter_dtype)],
        ),
        compiler_params=pltpu.CompilerParams(
            # j carries the down_ref scratch across OUT tiles -> "arbitrary".
            dimension_semantics=("parallel", "arbitrary"),
            vmem_limit_bytes=vmem_limit,
        ),
        cost_estimate=pl.CostEstimate(
            flops=flops, transcendentals=0, bytes_accessed=bytes_accessed),
    )(x2d, at, bt)

    return out2d.reshape(*orig_shape[:-1], out_features)


def _ref_forward(x, a_down, b_up):
    # Pure-JAX reference mirroring the PyTorch module exactly.
    down = jnp.einsum("...i,ri->...r", x, a_down)
    return jnp.einsum("...r,or->...o", down, b_up)


if __name__ == "__main__":
    # Module hyperparameters (small, consistent with the forward pass).
    batch, seq = 2, 8
    in_features, out_features, rank = 32, 32, 4
    init_std = 0.001

    key = jax.random.PRNGKey(0)
    kx, ka, ku, kx2, ka2, ku2 = jax.random.split(key, 6)

    # Case 1: the basic demo shape.
    x = jax.random.normal(kx, (batch, seq, in_features), dtype=jnp.float32)
    a_down = jax.random.normal(ka, (rank, in_features), jnp.float32) * init_std
    b_up = jax.random.normal(ku, (out_features, rank), jnp.float32) * init_std

    out = jax.block_until_ready(lora_forward(x, a_down, b_up))
    ref = _ref_forward(x, a_down, b_up)
    assert out.shape == (batch, seq, out_features)
    assert jnp.allclose(out, ref, atol=1e-8, rtol=1e-5), "mismatch vs reference"

    # Case 2: ragged M (partial last row block) and non-128 feature dims,
    # exercising the no-padding / masked-partial-block path.
    b2, s2, in2, out2, r2 = 3, 5, 48, 80, 4
    x2 = jax.random.normal(kx2, (b2, s2, in2), dtype=jnp.float32)
    a2 = jax.random.normal(ka2, (r2, in2), jnp.float32) * init_std
    u2 = jax.random.normal(ku2, (out2, r2), jnp.float32) * init_std
    out2_val = jax.block_until_ready(lora_forward(x2, a2, u2))
    ref2 = _ref_forward(x2, a2, u2)
    assert out2_val.shape == (b2, s2, out2)
    assert jnp.allclose(out2_val, ref2, atol=1e-8, rtol=1e-5), "mismatch (ragged case)"

    # Case 3: bf16 inputs, exercising the mixed-precision (bf16 intermediate)
    # path and the dtype-dependent sublane rounding.
    x3 = x.astype(jnp.bfloat16)
    a3 = a_down.astype(jnp.bfloat16)
    u3 = b_up.astype(jnp.bfloat16)
    out3 = jax.block_until_ready(lora_forward(x3, a3, u3))
    ref3 = _ref_forward(x3.astype(jnp.float32), a3.astype(jnp.float32),
                        u3.astype(jnp.float32))
    assert out3.shape == (batch, seq, out_features)
    assert jnp.allclose(out3.astype(jnp.float32), ref3,
                        atol=1e-6, rtol=1e-1), "mismatch (bf16 case)"

    print("KERNEL_OK")
</pallas_src>

<mosaic_0001>
module attributes {stable_mosaic.version = 11 : i64} {
  func.func @_lora_kernel(%arg0: i32, %arg1: i32, %arg2: memref<16x32xf32, #tpu.memory_space<vmem>>, %arg3: memref<32x4xf32, #tpu.memory_space<vmem>>, %arg4: memref<4x32xf32, #tpu.memory_space<vmem>>, %arg5: memref<16x32xf32, #tpu.memory_space<vmem>>, %arg6: memref<16x4xf32, #tpu.memory_space<vmem>>) attributes {dimension_semantics = [#tpu.dimension_semantics<parallel>, #tpu.dimension_semantics<arbitrary>], iteration_bounds = array<i64: 1, 1>, scalar_prefetch = 0 : i64, scratch_operands = 1 : i64, tpu.core_type = #tpu.core_type<tc>, window_params = [{transform_indices = @transform_0, window_bounds = array<i64: 16, 32>}, {pipeline_mode = #tpu.pipeline_mode<synchronous>, transform_indices = @transform_1, window_bounds = array<i64: 32, 4>}, {transform_indices = @transform_2, window_bounds = array<i64: 4, 32>}, {transform_indices = @transform_3, window_bounds = array<i64: 16, 32>}]} {
    %c0_i32 = arith.constant 0 : i32
    %0 = arith.cmpi eq, %arg1, %c0_i32 : i32
    %1 = arith.extui %0 : i1 to i32
    %c0_i32_0 = arith.constant 0 : i32
    %2 = arith.cmpi ne, %1, %c0_i32_0 : i32
    scf.if %2 {
      %c0_6 = arith.constant 0 : index
      %c0_7 = arith.constant 0 : index
      %7 = vector.load %arg2[%c0_6, %c0_7] : memref<16x32xf32, #tpu.memory_space<vmem>>, vector<16x32xf32>
      %c0_8 = arith.constant 0 : index
      %c0_9 = arith.constant 0 : index
      %8 = vector.load %arg3[%c0_8, %c0_9] : memref<32x4xf32, #tpu.memory_space<vmem>>, vector<32x4xf32>
      %cst_10 = arith.constant dense<0.000000e+00> : vector<16x4xf32>
      %9 = tpu.matmul %7, %8, %cst_10 {dimension_numbers = #tpu.dot_dimension_numbers<[1], [0], [0], [1], [0, 0, 1, 1], [], []>} : vector<16x32xf32>, vector<32x4xf32>, vector<16x4xf32> -> vector<16x4xf32>
      %c0_11 = arith.constant 0 : index
      %c0_12 = arith.constant 0 : index
      %10 = vector.load %arg6[%c0_11, %c0_12] : memref<16x4xf32, #tpu.memory_space<vmem>>, vector<16x4xf32>
      tpu.vector_store %arg6[%c0_11, %c0_12], %9 {strides = array<i32>} : memref<16x4xf32, #tpu.memory_space<vmem>>, vector<16x4xf32>,
    } else {
    }
    %c0 = arith.constant 0 : index
    %c0_1 = arith.constant 0 : index
    %3 = vector.load %arg6[%c0, %c0_1] : memref<16x4xf32, #tpu.memory_space<vmem>>, vector<16x4xf32>
    %c0_2 = arith.constant 0 : index
    %c0_3 = arith.constant 0 : index
    %4 = vector.load %arg4[%c0_2, %c0_3] : memref<4x32xf32, #tpu.memory_space<vmem>>, vector<4x32xf32>
    %cst = arith.constant dense<0.000000e+00> : vector<16x32xf32>
    %5 = tpu.matmul %3, %4, %cst {dimension_numbers = #tpu.dot_dimension_numbers<[1], [0], [0], [1], [0, 0, 1, 1], [], []>} : vector<16x4xf32>, vector<4x32xf32>, vector<16x32xf32> -> vector<16x32xf32>
    %c0_4 = arith.constant 0 : index
    %c0_5 = arith.constant 0 : index
    %6 = vector.load %arg5[%c0_4, %c0_5] : memref<16x32xf32, #tpu.memory_space<vmem>>, vector<16x32xf32>
    tpu.vector_store %arg5[%c0_4, %c0_5], %5 {strides = array<i32>} : memref<16x32xf32, #tpu.memory_space<vmem>>, vector<16x32xf32>,
    return
  }
  func.func @transform_0(%arg0: i32, %arg1: i32) -> (i32, i32) {
    %c0_i32 = arith.constant 0 : i32
    %c0_i32_0 = arith.constant 0 : i32
    return %arg0, %c0_i32 : i32, i32
  }
  func.func @transform_1(%arg0: i32, %arg1: i32) -> (i32, i32) {
    %c0_i32 = arith.constant 0 : i32
    %c0_i32_0 = arith.constant 0 : i32
    %c0_i32_1 = arith.constant 0 : i32
    return %c0_i32, %c0_i32_0 : i32, i32
  }
  func.func @transform_2(%arg0: i32, %arg1: i32) -> (i32, i32) {
    %c0_i32 = arith.constant 0 : i32
    %c0_i32_0 = arith.constant 0 : i32
    return %c0_i32, %arg1 : i32, i32
  }
  func.func @transform_3(%arg0: i32, %arg1: i32) -> (i32, i32) {
    %c0_i32 = arith.constant 0 : i32
    return %arg0, %arg1 : i32, i32
  }
}

</mosaic_0001>

<bundles_post_ra>
// kernel: lora_forward.1
= control target key start
LH: loop header
LB: loop body
LE: loop exit
PB: predicated region body
PF: predicated region fallthrough
CT: control target
= control target key end

     0   :  { %s206_s0 = inlined_call_operand.vmem [shape: f32[16,32], index: 0, kind: input, shape index: {}]   ;;  %s207_s1 = inlined_call_operand.vmem [shape: f32[32,4], index: 1, kind: input, shape index: {}]   ;;  %s208_s2 = inlined_call_operand.vmem [shape: f32[4,32], index: 2, kind: input, shape index: {}]   ;;  %s209_s3 = inlined_call_operand.hbm [shape: f32[16,32], index: 3, kind: output, shape index: {}]  }
   0x1   :  { %v24_v0 = vld [vmem:[%s207_s1 + $0x18] sm:$0xff]  ;;  %v23_v1 = vld [vmem:[%s207_s1 + $0x10] sm:$0xff]  ;;  %v22_v2 = vld [vmem:[%s207_s1 + $0x8] sm:$0xff] }
   0x2   :  { %121 = vmatpush.msra.mxu2 %v24_v0  ;;  %44 = vmatpush.msra.mxu0 %v24_v0 }
   0x3   :  { %8 = vsyncpa [#allocation4], 0  ;;  %v21_v3 = vld [vmem:[%s207_s1] sm:$0xff]  ;;  %v20_v4 = vld [vmem:[%s206_s0 + $0x8] sm:$0xff]  ;;  %vm25_vm0 = vcmask 261120   ;;  %vm68_vm1 = vcmask 1043456  }
   0x4   :  { %122 = vmatpush.msra.mxu2 %v23_v1  ;;  %45 = vmatpush.msra.mxu0 %v23_v1  ;;  %v19_v5 = vld [vmem:[%s206_s0] sm:$0xff]  ;;  %vm55_vm2 = vcmask 31744   ;;  %s155_s0 = smov [#allocation3]   ;;  %s156_s28 = smov 128  }
   0x5   :  { %v60_v6 = vld [vmem:[%s208_s2] sm:$0xf]  ;;  %s102_s1 = sshll.u32 %s155_s0, 4  ;;  %s104_s2 = sshll.u32 %s209_s3, 4  ;;  %s103_s1 = int_to_ptr.vmem [resolvable:$true] %s102_s1  ;;  %s105_s2 = int_to_ptr.hbm [resolvable:$true] %s104_s2 }
   0x6   :  { %123 = vmatpush.msra.mxu2 %v22_v2  ;;  %46 = vmatpush.msra.mxu0 %v22_v2  ;;  %s157_s29 = smov 8  }
   0x7   :  { %125 = vmatpush.msk.msra.mxu3 %vm68_vm1, %v60_v6  ;;  %118 = vmatpush.msk.msra.mxu1 %vm68_vm1, %v60_v6 }
   0x8   :  { %124 = vmatpush.msra.mxu2 %v21_v3  ;;  %47 = vmatpush.msra.mxu0 %v21_v3 }
   0x9   :  { %117 = vmatmul.msk.f32.vlgmr.msra.gmra.mxu2 %vm25_vm0, %v20_v4  ;;  %116 = vmatmul.msk.f32.vlgmr.msra.gmra.mxu0 %vm25_vm0, %v19_v5 }
  0x86   :  { %v49_v7 = vpop.f32.mrf.mxu0 }
  0x87   :  { %56 = vst.msk [vmem:[#allocation2] sm:$0xff] %vm55_vm2, %v49_v7 }
  0x8c   :  { %v52_v8 = vpop.f32.mrf.mxu2 }
  0x8d   :  { %57 = vst.msk [vmem:[#allocation2 + $0x8] sm:$0xff] %vm55_vm2, %v52_v8 }
  0x8e   :  { %v58_v9 = vld [vmem:[#allocation2] sm:$0xff] }
  0x8f   :  { %119 = vmatmul.msk.f32.vlgmr.msra.gmra.mxu1 %vm55_vm2, %v58_v9 }
  0x94   :  { %v59_v10 = vld [vmem:[#allocation2 + $0x8] sm:$0xff] }
  0x95   :  { %120 = vmatmul.msk.f32.vlgmr.msra.gmra.mxu3 %vm55_vm2, %v59_v10 }
 0x10c   :  { %v89_v11 = vpop.f32.mrf.mxu1 }
 0x10d   :  { %96 = vst.msk [vmem:[#allocation3] sm:$0xff] %vm25_vm0, %v89_v11 }
 0x118   :  { %v92_v12 = vpop.f32.mrf.mxu3 }
 0x119   :  { %97 = vst.msk [vmem:[#allocation3 + $0x8] sm:$0xff] %vm25_vm0, %v92_v12 }
 0x11a   :  { %110 = dma.vmem_to_hbm [thread:$0]  %s103_s1, 256, %s105_s2, [#allocation4], %s156_s28, %s156_s28, %s157_s29  }
 0x11b   :  { %153 = dma.done.wait [#allocation4], 256  }
 0x11c   :  { %154 = vsyncadd [#allocation4], 4294967040 }
 0x11d   :  { %115 = vsyncpa [#allocation4], 1 }

</bundles_post_ra>
